<compile_context>
chip_gen: v6e
topology: v6e:2x2x1
jax: 0.10.0
libtpu: 0.0.40
codegen_flags: <defaults>
</compile_context>

<pallas_src>
import functools

import jax
import jax.numpy as jnp
from jax.experimental import pallas as pl
from jax.experimental.pallas import tpu as pltpu


def tcn_block_kernel(x_ref, w2_ref, params_ref, o_ref, *, kernel_size, dilation, eps):
    N, C_in, L = x_ref.shape
    C_out, _ = w2_ref.shape
    K = kernel_size
    M = o_ref.shape[1]            # N * L_out
    L_out = M // N
    start = (L - L_out) // 2      # center_crop offset
    r = C_out // C_in             # res conv: groups=in_ch -> out channel o reads in channel o//r

    x = x_ref[...]                # (N, C_in, L) f32

    # ---- in-kernel im2col: one lane-dense (K*C_in, N*L_out) activation slab ----
    # Shift cost for the unaligned tap windows is paid exactly once per (n, k).
    sample_cols = []
    crop_cols = []
    for n in range(N):                                      # static unroll, small N
        xn = x[n]                                           # (C_in, L)
        taps = [xn[:, k * dilation:k * dilation + L_out] for k in range(K)]
        sample_cols.append(jnp.concatenate(taps, axis=0))   # (K*C_in, L_out)
        crop_cols.append(xn[:, start:start + L_out])        # (C_in, L_out)
    slab = jnp.concatenate(sample_cols, axis=1)             # (K*C_in, M)
    x_crop = jnp.concatenate(crop_cols, axis=1)             # (C_in, M)

    # ---- dilated conv1d (groups=1, bias=False): ONE MXU matmul ----
    y = jnp.dot(w2_ref[...], slab, preferred_element_type=jnp.float32)   # (C_out, M)

    # ---- BatchNorm1d, training-mode batch stats (biased variance), per channel ----
    cnt = float(M)
    mean = jnp.sum(y, axis=1, keepdims=True) / cnt           # (C_out, 1)
    d = y - mean
    var = jnp.sum(d * d, axis=1, keepdims=True) / cnt        # (C_out, 1)
    inv = jax.lax.rsqrt(var + eps)

    gamma = params_ref[:, 0:1]                               # (C_out, 1)
    beta = params_ref[:, 1:2]
    alpha = params_ref[:, 2:3]
    wres = params_ref[:, 3:4]

    yb = d * (inv * gamma) + beta                            # BN affine
    yp = jnp.where(yb >= 0.0, yb, alpha * yb)                # per-channel PReLU

    # ---- grouped 1x1 residual conv: per-channel VPU broadcast-multiply (no MXU) ----
    res_blocks = []
    for c in range(C_in):                                    # static unroll, small C_in
        # output rows [c*r, (c+1)*r) all read input row c, scaled by their own weight
        res_blocks.append(x_crop[c:c + 1, :] * wres[c * r:(c + 1) * r, :])   # (r, M)
    res = jnp.concatenate(res_blocks, axis=0)                # (C_out, M)

    # ---- single lane-dense output write ----
    o_ref[...] = (yp + res).astype(o_ref.dtype)


def tcn_block(x, w_conv1, w_res, bn_gamma, bn_beta, prelu_alpha,
              *, kernel_size=3, padding=0, dilation=1):
    assert padding == 0, "only the module default padding=0 is implemented"
    N, C_in, L = x.shape
    C_out = w_conv1.shape[0]
    K = kernel_size
    L_out = L - dilation * (K - 1)
    M = N * L_out
    assert C_out % C_in == 0, "res conv (groups=in_ch) requires out_ch % in_ch == 0"

    # Glue (layout plumbing only):
    #   conv weight -> (C_out, K*C_in) with row-matching order k*C_in + c for the im2col slab.
    w2 = jnp.transpose(w_conv1.astype(jnp.float32), (0, 2, 1)).reshape(C_out, K * C_in)
    #   pack all per-channel parameters into one small (C_out, 4) VMEM tile.
    params = jnp.stack(
        [bn_gamma.reshape(C_out), bn_beta.reshape(C_out),
         prelu_alpha.reshape(C_out), w_res.reshape(C_out)],
        axis=1).astype(jnp.float32)

    kern = functools.partial(tcn_block_kernel, kernel_size=K, dilation=dilation, eps=1e-5)
    vspec = pl.BlockSpec(memory_space=pltpu.MemorySpace.VMEM)

    flops = 2 * C_out * K * C_in * M + 8 * C_out * M
    bytes_accessed = 4 * (N * C_in * L + C_out * K * C_in + C_out * 4 + C_out * M)

    out2d = pl.pallas_call(
        kern,
        out_shape=jax.ShapeDtypeStruct((C_out, M), jnp.float32),
        in_specs=[vspec, vspec, vspec],
        out_specs=vspec,
        compiler_params=pltpu.CompilerParams(vmem_limit_bytes=32 * 1024 * 1024),
        cost_estimate=pl.CostEstimate(flops=flops, transcendentals=C_out,
                                      bytes_accessed=bytes_accessed),
    )(x.astype(jnp.float32), w2, params)

    # Lane-dense kernel layout (C_out, N*L_out) -> PyTorch (N, C_out, L_out).
    return out2d.reshape(C_out, N, L_out).transpose(1, 0, 2)


def tcn_block_ref(x, w_conv1, w_res, bn_gamma, bn_beta, prelu_alpha, *, dilation=1):
    """Plain-JAX reference for correctness checking."""
    N, C_in, L = x.shape
    C_out, _, K = w_conv1.shape
    y = jax.lax.conv_general_dilated(
        x, w_conv1, window_strides=(1,), padding="VALID",
        rhs_dilation=(dilation,), dimension_numbers=("NCH", "OIH", "NCH"))
    mean = jnp.mean(y, axis=(0, 2), keepdims=True)
    var = jnp.mean((y - mean) ** 2, axis=(0, 2), keepdims=True)
    y = (y - mean) / jnp.sqrt(var + 1e-5) * bn_gamma[None, :, None] + bn_beta[None, :, None]
    y = jnp.where(y >= 0, y, prelu_alpha[None, :, None] * y)
    r = C_out // C_in
    xr = w_res.reshape(C_out)[None, :, None] * x[:, jnp.arange(C_out) // r, :]
    L_out = y.shape[-1]
    start = (L - L_out) // 2
    return y + xr[..., start:start + L_out]


if __name__ == "__main__":
    # Small shapes consistent with the module: Conv1d input is (N, C, L).
    N, C_in, C_out, L, K, dil = 2, 4, 8, 16, 3, 1

    key = jax.random.PRNGKey(0)
    k_x, k_w1, k_wr, k_g, k_b, k_a = jax.random.split(key, 6)

    x = jax.random.normal(k_x, (N, C_in, L), jnp.float32)
    w_conv1 = jax.random.normal(k_w1, (C_out, C_in, K), jnp.float32) * 0.2     # conv1.weight
    w_res = jax.random.normal(k_wr, (C_out, 1, 1), jnp.float32) * 0.2          # res.weight
    bn_gamma = 1.0 + 0.1 * jax.random.normal(k_g, (C_out,), jnp.float32)       # bn.weight
    bn_beta = 0.1 * jax.random.normal(k_b, (C_out,), jnp.float32)              # bn.bias
    prelu_alpha = jnp.full((C_out,), 0.25, jnp.float32) \
        + 0.05 * jax.random.normal(k_a, (C_out,), jnp.float32)                 # relu.weight

    out = tcn_block(x, w_conv1, w_res, bn_gamma, bn_beta, prelu_alpha,
                    kernel_size=K, padding=0, dilation=dil)
    out = jax.block_until_ready(out)

    ref = tcn_block_ref(x, w_conv1, w_res, bn_gamma, bn_beta, prelu_alpha, dilation=dil)
    assert out.shape == (N, C_out, L - dil * (K - 1)), out.shape
    assert jnp.allclose(out, ref, atol=1e-4, rtol=1e-4), float(jnp.max(jnp.abs(out - ref)))

    print("KERNEL_OK")
</pallas_src>

<mosaic_0001>
module attributes {stable_mosaic.version = 11 : i64} {
  func.func @tcn_block_kernel(%arg0: memref<2x4x16xf32, #tpu.memory_space<vmem>>, %arg1: memref<8x12xf32, #tpu.memory_space<vmem>>, %arg2: memref<8x4xf32, #tpu.memory_space<vmem>>, %arg3: memref<8x28xf32, #tpu.memory_space<vmem>>) attributes {dimension_semantics = [], scalar_prefetch = 0 : i64, scratch_operands = 0 : i64, tpu.core_type = #tpu.core_type<tc>} {
    %c0 = arith.constant 0 : index
    %c0_0 = arith.constant 0 : index
    %c0_1 = arith.constant 0 : index
    %0 = vector.load %arg0[%c0, %c0_0, %c0_1] : memref<2x4x16xf32, #tpu.memory_space<vmem>>, vector<2x4x16xf32>
    %1 = vector.extract_strided_slice %0 {offsets = [0, 0, 0], sizes = [1, 4, 16], strides = [1, 1, 1]} : vector<2x4x16xf32> to vector<1x4x16xf32>
    %2 = vector.shape_cast %1 : vector<1x4x16xf32> to vector<4x16xf32>
    %3 = vector.extract_strided_slice %2 {offsets = [0, 0], sizes = [4, 14], strides = [1, 1]} : vector<4x16xf32> to vector<4x14xf32>
    %4 = vector.extract_strided_slice %2 {offsets = [0, 1], sizes = [4, 14], strides = [1, 1]} : vector<4x16xf32> to vector<4x14xf32>
    %5 = vector.extract_strided_slice %2 {offsets = [0, 2], sizes = [4, 14], strides = [1, 1]} : vector<4x16xf32> to vector<4x14xf32>
    %6 = tpu.concatenate %3, %4, %5 in 0 : vector<4x14xf32>, vector<4x14xf32>, vector<4x14xf32> -> vector<12x14xf32>
    %7 = vector.extract_strided_slice %2 {offsets = [0, 1], sizes = [4, 14], strides = [1, 1]} : vector<4x16xf32> to vector<4x14xf32>
    %8 = vector.extract_strided_slice %0 {offsets = [1, 0, 0], sizes = [1, 4, 16], strides = [1, 1, 1]} : vector<2x4x16xf32> to vector<1x4x16xf32>
    %9 = vector.shape_cast %8 : vector<1x4x16xf32> to vector<4x16xf32>
    %10 = vector.extract_strided_slice %9 {offsets = [0, 0], sizes = [4, 14], strides = [1, 1]} : vector<4x16xf32> to vector<4x14xf32>
    %11 = vector.extract_strided_slice %9 {offsets = [0, 1], sizes = [4, 14], strides = [1, 1]} : vector<4x16xf32> to vector<4x14xf32>
    %12 = vector.extract_strided_slice %9 {offsets = [0, 2], sizes = [4, 14], strides = [1, 1]} : vector<4x16xf32> to vector<4x14xf32>
    %13 = tpu.concatenate %10, %11, %12 in 0 : vector<4x14xf32>, vector<4x14xf32>, vector<4x14xf32> -> vector<12x14xf32>
    %14 = vector.extract_strided_slice %9 {offsets = [0, 1], sizes = [4, 14], strides = [1, 1]} : vector<4x16xf32> to vector<4x14xf32>
    %15 = tpu.concatenate %6, %13 in 1 : vector<12x14xf32>, vector<12x14xf32> -> vector<12x28xf32>
    %16 = tpu.concatenate %7, %14 in 1 : vector<4x14xf32>, vector<4x14xf32> -> vector<4x28xf32>
    %c0_2 = arith.constant 0 : index
    %c0_3 = arith.constant 0 : index
    %17 = vector.load %arg1[%c0_2, %c0_3] : memref<8x12xf32, #tpu.memory_space<vmem>>, vector<8x12xf32>
    %cst = arith.constant dense<0.000000e+00> : vector<8x28xf32>
    %18 = tpu.matmul %17, %15, %cst {dimension_numbers = #tpu.dot_dimension_numbers<[1], [0], [0], [1], [0, 0, 1, 1], [], []>} : vector<8x12xf32>, vector<12x28xf32>, vector<8x28xf32> -> vector<8x28xf32>
    %cst_4 = arith.constant dense<0.000000e+00> : vector<8xf32>
    %19 = vector.multi_reduction <add>, %18, %cst_4 [1] : vector<8x28xf32> to vector<8xf32>
    %20 = vector.shape_cast %19 : vector<8xf32> to vector<8x1xf32>
    %cst_5 = arith.constant 2.800000e+01 : f32
    %21 = vector.broadcast %cst_5 : f32 to vector<8x1xf32>
    %22 = arith.divf %20, %21 : vector<8x1xf32>
    %23 = vector.broadcast %22 : vector<8x1xf32> to vector<8x28xf32>
    %24 = arith.subf %18, %23 : vector<8x28xf32>
    %25 = arith.mulf %24, %24 : vector<8x28xf32>
    %cst_6 = arith.constant dense<0.000000e+00> : vector<8xf32>
    %26 = vector.multi_reduction <add>, %25, %cst_6 [1] : vector<8x28xf32> to vector<8xf32>
    %27 = vector.shape_cast %26 : vector<8xf32> to vector<8x1xf32>
    %cst_7 = arith.constant 2.800000e+01 : f32
    %28 = vector.broadcast %cst_7 : f32 to vector<8x1xf32>
    %29 = arith.divf %27, %28 : vector<8x1xf32>
    %cst_8 = arith.constant 9.99999974E-6 : f32
    %30 = vector.broadcast %cst_8 : f32 to vector<8x1xf32>
    %31 = arith.addf %29, %30 : vector<8x1xf32>
    %32 = math.rsqrt %31 : vector<8x1xf32>
    %c0_9 = arith.constant 0 : index
    %c0_10 = arith.constant 0 : index
    %33 = vector.load %arg2[%c0_9, %c0_10] : memref<8x4xf32, #tpu.memory_space<vmem>>, vector<8x1xf32>
    %c0_11 = arith.constant 0 : index
    %c1 = arith.constant 1 : index
    %34 = vector.load %arg2[%c0_11, %c1] : memref<8x4xf32, #tpu.memory_space<vmem>>, vector<8x1xf32>
    %c0_12 = arith.constant 0 : index
    %c2 = arith.constant 2 : index
    %35 = vector.load %arg2[%c0_12, %c2] : memref<8x4xf32, #tpu.memory_space<vmem>>, vector<8x1xf32>
    %c0_13 = arith.constant 0 : index
    %c3 = arith.constant 3 : index
    %36 = vector.load %arg2[%c0_13, %c3] : memref<8x4xf32, #tpu.memory_space<vmem>>, vector<8x1xf32>
    %37 = arith.mulf %32, %33 : vector<8x1xf32>
    %38 = vector.broadcast %37 : vector<8x1xf32> to vector<8x28xf32>
    %39 = arith.mulf %24, %38 : vector<8x28xf32>
    %40 = vector.broadcast %34 : vector<8x1xf32> to vector<8x28xf32>
    %41 = arith.addf %39, %40 : vector<8x28xf32>
    %cst_14 = arith.constant 0.000000e+00 : f32
    %42 = vector.broadcast %cst_14 : f32 to vector<8x28xf32>
    %43 = arith.cmpf oge, %41, %42 : vector<8x28xf32>
    %44 = vector.broadcast %35 : vector<8x1xf32> to vector<8x28xf32>
    %45 = arith.mulf %44, %41 : vector<8x28xf32>
    %46 = arith.select %43, %41, %45 : vector<8x28xi1>, vector<8x28xf32>
    %47 = vector.extract_strided_slice %16 {offsets = [0, 0], sizes = [1, 28], strides = [1, 1]} : vector<4x28xf32> to vector<1x28xf32>
    %48 = vector.extract_strided_slice %36 {offsets = [0, 0], sizes = [2, 1], strides = [1, 1]} : vector<8x1xf32> to vector<2x1xf32>
    %49 = vector.broadcast %47 : vector<1x28xf32> to vector<2x28xf32>
    %50 = vector.broadcast %48 : vector<2x1xf32> to vector<2x28xf32>
    %51 = arith.mulf %49, %50 : vector<2x28xf32>
    %52 = vector.extract_strided_slice %16 {offsets = [1, 0], sizes = [1, 28], strides = [1, 1]} : vector<4x28xf32> to vector<1x28xf32>
    %53 = vector.extract_strided_slice %36 {offsets = [2, 0], sizes = [2, 1], strides = [1, 1]} : vector<8x1xf32> to vector<2x1xf32>
    %54 = vector.broadcast %52 : vector<1x28xf32> to vector<2x28xf32>
    %55 = vector.broadcast %53 : vector<2x1xf32> to vector<2x28xf32>
    %56 = arith.mulf %54, %55 : vector<2x28xf32>
    %57 = vector.extract_strided_slice %16 {offsets = [2, 0], sizes = [1, 28], strides = [1, 1]} : vector<4x28xf32> to vector<1x28xf32>
    %58 = vector.extract_strided_slice %36 {offsets = [4, 0], sizes = [2, 1], strides = [1, 1]} : vector<8x1xf32> to vector<2x1xf32>
    %59 = vector.broadcast %57 : vector<1x28xf32> to vector<2x28xf32>
    %60 = vector.broadcast %58 : vector<2x1xf32> to vector<2x28xf32>
    %61 = arith.mulf %59, %60 : vector<2x28xf32>
    %62 = vector.extract_strided_slice %16 {offsets = [3, 0], sizes = [1, 28], strides = [1, 1]} : vector<4x28xf32> to vector<1x28xf32>
    %63 = vector.extract_strided_slice %36 {offsets = [6, 0], sizes = [2, 1], strides = [1, 1]} : vector<8x1xf32> to vector<2x1xf32>
    %64 = vector.broadcast %62 : vector<1x28xf32> to vector<2x28xf32>
    %65 = vector.broadcast %63 : vector<2x1xf32> to vector<2x28xf32>
    %66 = arith.mulf %64, %65 : vector<2x28xf32>
    %67 = tpu.concatenate %51, %56, %61, %66 in 0 : vector<2x28xf32>, vector<2x28xf32>, vector<2x28xf32>, vector<2x28xf32> -> vector<8x28xf32>
    %68 = arith.addf %46, %67 : vector<8x28xf32>
    %c0_15 = arith.constant 0 : index
    %c0_16 = arith.constant 0 : index
    %69 = vector.load %arg3[%c0_15, %c0_16] : memref<8x28xf32, #tpu.memory_space<vmem>>, vector<8x28xf32>
    tpu.vector_store %arg3[%c0_15, %c0_16], %68 {strides = array<i32>} : memref<8x28xf32, #tpu.memory_space<vmem>>, vector<8x28xf32>,
    return
  }
}

</mosaic_0001>

<bundles_post_ra>
// kernel: tpu_custom_call.1
= control target key start
LH: loop header
LB: loop body
LE: loop exit
PB: predicated region body
PF: predicated region fallthrough
CT: control target
= control target key end

     0   :  { %8 = vsyncpa [#allocation3], 0  ;;  %s358_s0 = inlined_call_operand.vmem [shape: f32[2,4,16], index: 0, kind: input, shape index: {}]   ;;  %s359_s1 = inlined_call_operand.hbm [shape: f32[8,12], index: 1, kind: input, shape index: {}]   ;;  %s360_s2 = inlined_call_operand.vmem [shape: f32[8,4], index: 2, kind: input, shape index: {}]   ;;  %s361_s3 = inlined_call_operand.hbm [shape: f32[8,28], index: 3, kind: output, shape index: {}]  }
   0x1   :  { %9 = vsyncpa [#allocation4], 0  ;;  %s298_s12 = smov [#allocation2]  }
   0x2   :  { %s18_s13 = sshll.u32 %s298_s12, 4  ;;  %s19_s13 = int_to_ptr.vmem [resolvable:$true] %s18_s13 }
   0x3   :  { %s262_s14 = scalar_lea.vmem %s19_s13, 128  ;;  %p267_p1 = scmp.lt.s32.totalorder %s19_s13, %s19_s13 }
   0x4   :  { %p263_p0 = scmp.ne.s32.totalorder %s19_s13, %s262_s14  ;;  %p268_p2 = scmp.lt.s32.totalorder %s262_s14, %s262_s14 }
   0x6   :  { %p269_p3 = por %p268_p2, %p267_p1 }
   0x8   :  { %p270_p4 = pnand %p269_p3, %p263_p0 }
   0xa   :  { %273 = shalt.err (!%p270_p4)
}
   0xb   :  { %21 = dma.hbm_to_vmem [thread:$0]  %s359_s1, 128, %s19_s13, [#allocation3]  }
   0xc   :  { %294 = dma.done.wait [#allocation3], 128  }
   0xd   :  { %295 = vsyncadd [#allocation3], 4294967168  ;;  %v28_v0 = vld [vmem:[%s358_s0 + $0x4] sm:$0xf]  ;;  %v27_v1 = vld [vmem:[%s358_s0] sm:$0xf]  ;;  %v177_v37 = vlaneseq }
   0xe   :  { %s299_s21 = smov 126   ;;  %v40_v2 = vrot.slane %v28_v0, 4  ;;  %s300_s22 = smov 127   ;;  %v30_v3 = vrot.slane %v27_v1, 4  ;;  %v301_v4 = vmov 0.0   ;;  %vm302_vm0 = vmmov 0  }
   0xf   :  { %44 = vrot.lane.b32.xlu0 %v28_v0, %s299_s21  ;;  %34 = vrot.lane.b32.xlu1 %v27_v1, %s299_s21  ;;  %s303_s1 = smov 14   ;;  %vm37_vm1 = vcmask 1043456   ;;  %vm54_vm2 = vcmask 113664   ;;  %v64_v14 = vld [vmem:[#allocation2] sm:$0xff]  ;;  %vm65_vm3 = vcmask 97280   ;;  %vm142_vm4 = vcmask 228352  }
  0x10   :  { %228 = vmatprep.subr.mxu0 %v301_v4  ;;  %232 = vmatprep.mubr.msk.f32.mxu0 %vm302_vm0, %v301_v4  ;;  %v304_v19 = vmov 1   ;;  %v156_v25 = vld [vmem:[%s360_s2] sm:$0xff]  ;;  %v305_v26 = vmov 0   ;;  %v306_v27 = vmov 3   ;;  %s307_s24 = smov 13   ;;  %v308_v28 = vmov 2  }
  0x11   :  { %248 = vset.pattern.permute.xlu1 %v304_v19  ;;  %247 = vset.pattern.permute.xlu0 %v305_v26  ;;  %v178_v38 = vshrl.u32 %v177_v37, 7  ;;  %vm201_vm5 = vcmask 1041408   ;;  %vm204_vm6 = vcmask 1045504   ;;  %s309_s2 = smov [#allocation5]  }
  0x12   :  { %s214_s25 = sshll.u32 %s309_s2, 4  ;;  %s215_s25 = int_to_ptr.vmem [resolvable:$true] %s214_s25 }
  0x13   :  { %41 = vrot.lane.b32.xlu0 %v40_v2, %s300_s22  ;;  %v179_v40 = vsub.s32 0, %v178_v38  ;;  %v188_v41 = vsub.s32 1, %v178_v38  ;;  %v193_v43 = vsub.s32 2, %v178_v38  ;;  %v198_v46 = vsub.s32 3, %v178_v38  ;;  %s274_s26 = scalar_lea.vmem %s215_s25, 128  ;;  %p279_p6 = scmp.lt.s32.totalorder %s215_s25, %s215_s25 }
  0x14   :  { %p275_p5 = scmp.ne.s32.totalorder %s215_s25, %s274_s26  ;;  %p280_p7 = scmp.lt.s32.totalorder %s274_s26, %s274_s26 }
  0x16   :  { %p281_p8 = por %p280_p7, %p279_p6 }
  0x17   :  { %31 = vrot.lane.b32.xlu0 %v30_v3, %s300_s22 }
  0x18   :  { %p282_p9 = pnand %p281_p8, %p275_p5 }
  0x81   :  { %v45_v5 = vpop.permute.xlu0 %44  ;;  %v35_v8 = vpop.permute.xlu1 %34 }
  0x82   :  { %50 = vrot.lane.b32.xlu1 %v45_v5, %s303_s1 }
  0x85   :  { %v42_v6 = vpop.permute.xlu0 %41 }
  0x86   :  { %v46_v7 = vsel %vm37_vm1, %v28_v0, %v42_v6 }
  0x87   :  { %48 = vrot.lane.b32.xlu1 %v46_v7, %s303_s1 }
  0x89   :  { %v32_v10 = vpop.permute.xlu0 %31 }
  0x8a   :  { %v38_v12 = vsel %vm37_vm1, %v27_v1, %v32_v10 }
  0xf4   :  { %v51_v9 = vpop.permute.xlu1 %50 }
  0xf5   :  { %v56_v11 = vsel %vm54_vm2, %v35_v8, %v51_v9 }
  0xf6   :  { %229 = vmatpush3.msk.msra.mxu0 %vm37_vm1, %v56_v11 }
  0xf7   :  { %230 = vmatprep.subr.mxu0 %v301_v4 }
  0xf9   :  { %v49_v13 = vpop.permute.xlu1 %48 }
  0xfa   :  { %v55_v15 = vsel %vm54_vm2, %v38_v12, %v49_v13 }
  0xfb   :  { %231 = vmatpush3.msra.mxu0 %v55_v15 }
  0xfc   :  { %233 = vmatmul.mubr.msk.f32.vlgmr.msra.gmra.mxu0 %vm65_vm3, %v64_v14 }
 0x1bc   :  { %v138_v16 = vpop.f32.mrf.mxu0 }
 0x1bd   :  { %v143_v17 = vsel %vm142_vm4, %v138_v16, 0.0 }
 0x1be   :  { %144 = vadd.xlane.f32.xlu0 %v143_v17  ;;  %v234_v18 = vpop.f32.mrf.mxu0 }
 0x247   :  { %v145_v20 = vpop.xlane.xlu0 %144 }
 0x248   :  { %v147_v21 = vmul.f32 0.035714287, %v145_v20 }
 0x24a   :  { %v148_v22 = vsub.f32 %v138_v16, %v147_v21 }
 0x24c   :  { %v149_v23 = vmul.f32 %v148_v22, %v148_v22 }
 0x24e   :  { %v150_v24 = vsel %vm142_vm4, %v149_v23, 0.0 }
 0x24f   :  { %151 = vadd.xlane.f32.xlu1 %v150_v24 }
 0x260   :  { %166 = vperm.xlu1 %248, %v156_v25  }
 0x264   :  { %249 = vset.pattern.permute.xlu1 %v306_v27 }
 0x265   :  { %182 = vperm.xlu1 %249, %v156_v25  }
 0x269   :  { %57 = vrot.lane.b32.xlu1 %v27_v1, %s300_s22 }
 0x26a   :  { %250 = vset.pattern.permute.xlu1 %v308_v28 }
 0x26d   :  { %60 = vrot.lane.b32.xlu1 %v28_v0, %s307_s24 }
 0x271   :  { %172 = vperm.xlu1 %250, %v156_v25  }
 0x2d8   :  { %v152_v29 = vpop.xlane.xlu1 %151 }
 0x2d9   :  { %v153_v30 = vmul.f32 0.035714287, %v152_v29 }
 0x2db   :  { %v154_v31 = vadd.f32 1e-05, %v153_v30 }
 0x2dc   :  { %v167_v34 = vpop.permute.xlu1 %166 }
 0x2dd   :  { %252 = vrsqrt.f32 %v154_v31 }
 0x2e0   :  { %v183_v35 = vpop.permute.xlu1 %182 }
 0x2e4   :  { %v58_v36 = vpop.permute.xlu1 %57 }
 0x2e8   :  { %v61_v39 = vpop.permute.xlu1 %60 }
 0x2e9   :  { %v63_v42 = vsel %vm54_vm2, %v58_v36, %v61_v39 }
 0x2ea   :  { %v253_v32 = vpop.eup %252  ;;  %v180_v44 = vrot.slane %v63_v42, %v179_v40  ;;  %v189_v45 = vrot.slane %v63_v42, %v188_v41  ;;  %v194_v47 = vrot.slane %v63_v42, %v193_v43  ;;  %v199_v50 = vrot.slane %v63_v42, %v198_v46 }
 0x2eb   :  { %v157_v33 = vmul.f32 %v253_v32, %v156_v25 }
 0x2ec   :  { %v185_v48 = vmul.f32 %v183_v35, %v180_v44  ;;  %v190_v49 = vmul.f32 %v189_v45, %v183_v35  ;;  %v195_v51 = vmul.f32 %v194_v47, %v183_v35  ;;  %v173_v55 = vpop.permute.xlu1 %172  ;;  %v200_v56 = vmul.f32 %v199_v50, %v183_v35 }
 0x2ed   :  { %160 = vperm.xlu0 %247, %v157_v33  }
 0x2ee   :  { %v202_v54 = vsel %vm201_vm5, %v185_v48, %v190_v49 }
 0x2ef   :  { %v203_v58 = vsel %vm37_vm1, %v202_v54, %v195_v51 }
 0x2f0   :  { %v205_v60 = vsel %vm204_vm6, %v203_v58, %v200_v56 }
 0x2f1   :  { %251 = vset.pattern.permute.xlu0 %v306_v27 }
 0x368   :  { %v161_v52 = vpop.permute.xlu0 %160 }
 0x369   :  { %v163_v53 = vmul.f32 %v161_v52, %v148_v22 }
 0x36b   :  { %v169_v57 = vadd.f32 %v167_v34, %v163_v53 }
 0x36d   :  { %vm170_vm7 = vcmp.ge.f32.partialorder %v169_v57, 0.0  ;;  %v175_v59 = vmul.f32 %v173_v55, %v169_v57 }
 0x36f   :  { %v176_v61 = vsel %vm170_vm7, %v169_v57, %v175_v59 }
 0x370   :  { %v206_v62 = vadd.f32 %v205_v60, %v176_v61 }
 0x372   :  { %207 = vst.msk [vmem:[#allocation5] sm:$0xff] %vm142_vm4, %v206_v62 }
 0x373   :  { %285 = shalt.err (!%p282_p9)
}
 0x374   :  { %217 = dma.vmem_to_hbm [thread:$0]  %s215_s25, 128, %s361_s3, [#allocation4]  }
 0x375   :  { %296 = dma.done.wait [#allocation4], 128  }
 0x376   :  { %297 = vsyncadd [#allocation4], 4294967168 }
 0x377   :  { %221 = vsyncpa [#allocation3], 1 }
 0x378   :  { %222 = vsyncpa [#allocation4], 1 }

</bundles_post_ra>
